<compile_context>
chip_gen: v5e
topology: v5e:2x2
jax: 0.10.0
libtpu: 0.0.40
codegen_flags: <defaults>
</compile_context>

<pallas_src>
import functools

import jax
import jax.numpy as jnp
from jax.experimental import pallas as pl
from jax.experimental.pallas import tpu as pltpu

BN_EPS = 1e-5
LANE = 128


def _round_up(x: int, m: int) -> int:
    return (x + m - 1) // m * m


def _make_mlp_kernel(n_hidden_layer: int, use_bf16_matmul: bool):
    """Fused MLP kernel: L x (Linear -> BN(train) -> ReLU) -> Linear."""
    has_rest = n_hidden_layer > 1
    mxu_dtype = jnp.bfloat16 if use_bf16_matmul else jnp.float32

    def kernel(*refs):
        if has_rest:
            x_ref, w0_ref, wrest_ref, gb_ref, wout_ref, bout_ref, out_ref = refs
        else:
            x_ref, w0_ref, gb_ref, wout_ref, bout_ref, out_ref = refs
            wrest_ref = None

        h = x_ref[...].astype(jnp.float32)

        for l in range(n_hidden_layer):
            w = w0_ref[...] if l == 0 else wrest_ref[l - 1]
            # Linear WITHOUT bias: the bias is cancelled by the BN mean
            # subtraction below (exact up to float rounding).
            h = jnp.dot(h.astype(mxu_dtype), w.astype(mxu_dtype),
                        preferred_element_type=jnp.float32)

            # BatchNorm1d (training mode: batch stats, biased variance),
            # folded with the affine transform, then ReLU.
            mu = jnp.mean(h, axis=0, keepdims=True)
            centered = h - mu
            var = jnp.mean(centered * centered, axis=0, keepdims=True)
            gamma = gb_ref[2 * l:2 * l + 1, :]          # (1, Hp) static slice
            beta = gb_ref[2 * l + 1:2 * l + 2, :]       # (1, Hp) static slice
            s = gamma * jax.lax.rsqrt(var + BN_EPS)     # EUP rsqrt (free slot)
            h = jnp.maximum(centered * s + beta, 0.0)

        out = jnp.dot(h.astype(mxu_dtype), wout_ref[...].astype(mxu_dtype),
                      preferred_element_type=jnp.float32) + bout_ref[...]
        out_ref[...] = out.astype(out_ref.dtype)        # lane-dense (N, 128) store

    return kernel


def mlp_forward(x_nchw, packed, *, n_hidden_layer: int, num_classes: int,
                use_bf16_matmul: bool = False):
    """Run the fused Pallas MLP kernel on padded, packed parameters."""
    n = x_nchw.shape[0]
    x_flat = x_nchw.reshape(n, -1)
    size_in = x_flat.shape[1]
    size_in_p = _round_up(size_in, LANE)
    if size_in_p != size_in:
        x_flat = jnp.pad(x_flat, ((0, 0), (0, size_in_p - size_in)))

    inputs = [x_flat, packed["w0"]]
    if packed["w_rest"] is not None:
        inputs.append(packed["w_rest"])
    inputs += [packed["gb"], packed["w_out"], packed["b_out"]]

    out_p = packed["w_out"].shape[1]
    hid_p = packed["w_out"].shape[0]

    # Everything stays resident in VMEM (no grid).  Budget it explicitly so the
    # same structure stays valid on v7x (64 MiB physical, 32 MiB scoped default).
    resident_bytes = sum(int(a.size) * 4 for a in inputs) + n * (out_p + hid_p) * 4
    vmem_limit = int(min(max(3 * resident_bytes + (4 << 20), 32 << 20), 60 << 20))

    vmem_spec = pl.BlockSpec(memory_space=pltpu.MemorySpace.VMEM)
    kernel = _make_mlp_kernel(n_hidden_layer, use_bf16_matmul)

    # NOTE: no grid — training-mode BN needs full-batch statistics, and all
    # weights/activations fit VMEM at these sizes.  If hidden sizes grow, add a
    # feature/K-tiled grid ("parallel" for v7x megacore) with a two-pass BN.
    out_padded = pl.pallas_call(
        kernel,
        out_shape=jax.ShapeDtypeStruct((n, out_p), jnp.float32),
        in_specs=[vmem_spec] * len(inputs),
        out_specs=vmem_spec,
        compiler_params=pltpu.CompilerParams(vmem_limit_bytes=vmem_limit),
    )(*inputs)
    return out_padded[:, :num_classes]


def init_params(key, size_in, num_classes, n_hidden_layer, n_hidden_units):
    """PyTorch-Linear-style init (uniform +/- 1/sqrt(fan_in)).

    Returns (packed, raw):
      packed : lane-padded, stacked params consumed by the kernel
               (hidden biases omitted — they cancel against BN).
      raw    : unpadded per-layer list [W, b, gamma, beta]*L + [W_out, b_out]
               (with biases) for the pure-JAX reference.
    """
    size_in_p = _round_up(size_in, LANE)
    hid_p = _round_up(n_hidden_units, LANE)
    out_p = _round_up(num_classes, LANE)

    raw = []
    w_hidden_padded = []
    gb_rows = []

    fan_in = size_in
    for l in range(n_hidden_layer):
        key, kw, kb = jax.random.split(key, 3)
        bound = float(fan_in) ** -0.5
        w = jax.random.uniform(kw, (fan_in, n_hidden_units), jnp.float32, -bound, bound)
        b = jax.random.uniform(kb, (1, n_hidden_units), jnp.float32, -bound, bound)
        gamma = jnp.ones((1, n_hidden_units), jnp.float32)
        beta = jnp.zeros((1, n_hidden_units), jnp.float32)
        raw += [w, b, gamma, beta]

        rows = size_in_p if l == 0 else hid_p
        wp = jnp.zeros((rows, hid_p), jnp.float32).at[:fan_in, :n_hidden_units].set(w)
        w_hidden_padded.append(wp)
        # gamma/beta of padded features are 0 so padded lanes stay exactly zero.
        gb_rows.append(jnp.zeros((hid_p,), jnp.float32).at[:n_hidden_units].set(gamma[0]))
        gb_rows.append(jnp.zeros((hid_p,), jnp.float32).at[:n_hidden_units].set(beta[0]))
        fan_in = n_hidden_units

    key, kw, kb = jax.random.split(key, 3)
    bound = float(fan_in) ** -0.5
    w_out = jax.random.uniform(kw, (fan_in, num_classes), jnp.float32, -bound, bound)
    b_out = jax.random.uniform(kb, (1, num_classes), jnp.float32, -bound, bound)
    raw += [w_out, b_out]

    packed = {
        "w0": w_hidden_padded[0],                                            # (Sin_p, Hp)
        "w_rest": (jnp.stack(w_hidden_padded[1:])
                   if n_hidden_layer > 1 else None),                         # (L-1, Hp, Hp)
        "gb": jnp.stack(gb_rows),                                            # (2L, Hp)
        "w_out": jnp.zeros((hid_p, out_p), jnp.float32)
                   .at[:fan_in, :num_classes].set(w_out),                    # (Hp, 128)
        "b_out": jnp.zeros((1, out_p), jnp.float32)
                   .at[:, :num_classes].set(b_out),                          # (1, 128)
    }
    return packed, raw


def mlp_reference(x_nchw, raw_params, *, n_hidden_layer: int):
    """Pure-JAX reference matching the PyTorch module (biases included)."""
    h = x_nchw.reshape(x_nchw.shape[0], -1).astype(jnp.float32)
    idx = 0
    for _ in range(n_hidden_layer):
        w, b, g, be = raw_params[idx:idx + 4]
        idx += 4
        h = h @ w + b
        mu = jnp.mean(h, axis=0, keepdims=True)
        var = jnp.mean((h - mu) ** 2, axis=0, keepdims=True)
        h = jnp.maximum((h - mu) / jnp.sqrt(var + BN_EPS) * g + be, 0.0)
    return h @ raw_params[idx] + raw_params[idx + 1]


if __name__ == "__main__":
    # Small shapes consistent with the module: NCHW input flattened to size_in.
    batch = 8                       # training-mode BN needs the full batch
    c, hh, ww = 1, 8, 8             # size_in = 64
    size_in = c * hh * ww
    num_classes = 10
    n_hidden_layer = 3
    n_hidden_units = 32

    key = jax.random.PRNGKey(0)
    key, kx = jax.random.split(key)
    x = jax.random.normal(kx, (batch, c, hh, ww), dtype=jnp.float32)

    packed, raw = init_params(key, size_in, num_classes, n_hidden_layer, n_hidden_units)

    run = jax.jit(functools.partial(
        mlp_forward, n_hidden_layer=n_hidden_layer, num_classes=num_classes,
        use_bf16_matmul=False))     # set True on v6e/v7x at large hidden sizes
    out = jax.block_until_ready(run(x, packed))

    ref = mlp_reference(x, raw, n_hidden_layer=n_hidden_layer)
    assert out.shape == (batch, num_classes)
    assert jnp.allclose(out, ref, atol=1e-4, rtol=1e-4), "mismatch vs JAX reference"

    print("KERNEL_OK")
</pallas_src>

<mosaic_0001>
module attributes {stable_mosaic.version = 11 : i64} {
  func.func @kernel(%arg0: memref<8x128xf32, #tpu.memory_space<vmem>>, %arg1: memref<128x128xf32, #tpu.memory_space<vmem>>, %arg2: memref<2x128x128xf32, #tpu.memory_space<vmem>>, %arg3: memref<6x128xf32, #tpu.memory_space<vmem>>, %arg4: memref<128x128xf32, #tpu.memory_space<vmem>>, %arg5: memref<1x128xf32, #tpu.memory_space<vmem>>, %arg6: memref<8x128xf32, #tpu.memory_space<vmem>>) attributes {dimension_semantics = [], scalar_prefetch = 0 : i64, scratch_operands = 0 : i64, tpu.core_type = #tpu.core_type<tc>} {
    %c0 = arith.constant 0 : index
    %c0_0 = arith.constant 0 : index
    %0 = vector.load %arg0[%c0, %c0_0] : memref<8x128xf32, #tpu.memory_space<vmem>>, vector<8x128xf32>
    %c0_1 = arith.constant 0 : index
    %c0_2 = arith.constant 0 : index
    %1 = vector.load %arg1[%c0_1, %c0_2] : memref<128x128xf32, #tpu.memory_space<vmem>>, vector<128x128xf32>
    %cst = arith.constant dense<0.000000e+00> : vector<8x128xf32>
    %2 = tpu.matmul %0, %1, %cst {dimension_numbers = #tpu.dot_dimension_numbers<[1], [0], [0], [1], [0, 0, 1, 1], [], []>} : vector<8x128xf32>, vector<128x128xf32>, vector<8x128xf32> -> vector<8x128xf32>
    %cst_3 = arith.constant dense<0.000000e+00> : vector<128xf32>
    %3 = vector.multi_reduction <add>, %2, %cst_3 [0] : vector<8x128xf32> to vector<128xf32>
    %4 = vector.shape_cast %3 : vector<128xf32> to vector<1x128xf32>
    %cst_4 = arith.constant 8.000000e+00 : f32
    %5 = vector.broadcast %cst_4 : f32 to vector<1x128xf32>
    %6 = arith.divf %4, %5 : vector<1x128xf32>
    %7 = vector.broadcast %6 : vector<1x128xf32> to vector<8x128xf32>
    %8 = arith.subf %2, %7 : vector<8x128xf32>
    %9 = arith.mulf %8, %8 : vector<8x128xf32>
    %cst_5 = arith.constant dense<0.000000e+00> : vector<128xf32>
    %10 = vector.multi_reduction <add>, %9, %cst_5 [0] : vector<8x128xf32> to vector<128xf32>
    %11 = vector.shape_cast %10 : vector<128xf32> to vector<1x128xf32>
    %cst_6 = arith.constant 8.000000e+00 : f32
    %12 = vector.broadcast %cst_6 : f32 to vector<1x128xf32>
    %13 = arith.divf %11, %12 : vector<1x128xf32>
    %c0_7 = arith.constant 0 : index
    %c0_8 = arith.constant 0 : index
    %14 = vector.load %arg3[%c0_7, %c0_8] : memref<6x128xf32, #tpu.memory_space<vmem>>, vector<1x128xf32>
    %c1 = arith.constant 1 : index
    %c0_9 = arith.constant 0 : index
    %15 = vector.load %arg3[%c1, %c0_9] : memref<6x128xf32, #tpu.memory_space<vmem>>, vector<1x128xf32>
    %cst_10 = arith.constant 9.99999974E-6 : f32
    %16 = vector.broadcast %cst_10 : f32 to vector<1x128xf32>
    %17 = arith.addf %13, %16 : vector<1x128xf32>
    %18 = math.rsqrt %17 : vector<1x128xf32>
    %19 = arith.mulf %14, %18 : vector<1x128xf32>
    %20 = vector.broadcast %19 : vector<1x128xf32> to vector<8x128xf32>
    %21 = arith.mulf %8, %20 : vector<8x128xf32>
    %22 = vector.broadcast %15 : vector<1x128xf32> to vector<8x128xf32>
    %23 = arith.addf %21, %22 : vector<8x128xf32>
    %cst_11 = arith.constant 0.000000e+00 : f32
    %24 = vector.broadcast %cst_11 : f32 to vector<8x128xf32>
    %25 = arith.maximumf %23, %24 : vector<8x128xf32>
    %c0_12 = arith.constant 0 : index
    %c0_13 = arith.constant 0 : index
    %c0_14 = arith.constant 0 : index
    %26 = vector.load %arg2[%c0_12, %c0_13, %c0_14] : memref<2x128x128xf32, #tpu.memory_space<vmem>>, vector<1x128x128xf32>
    %27 = vector.shape_cast %26 : vector<1x128x128xf32> to vector<128x128xf32>
    %cst_15 = arith.constant dense<0.000000e+00> : vector<8x128xf32>
    %28 = tpu.matmul %25, %27, %cst_15 {dimension_numbers = #tpu.dot_dimension_numbers<[1], [0], [0], [1], [0, 0, 1, 1], [], []>} : vector<8x128xf32>, vector<128x128xf32>, vector<8x128xf32> -> vector<8x128xf32>
    %cst_16 = arith.constant dense<0.000000e+00> : vector<128xf32>
    %29 = vector.multi_reduction <add>, %28, %cst_16 [0] : vector<8x128xf32> to vector<128xf32>
    %30 = vector.shape_cast %29 : vector<128xf32> to vector<1x128xf32>
    %cst_17 = arith.constant 8.000000e+00 : f32
    %31 = vector.broadcast %cst_17 : f32 to vector<1x128xf32>
    %32 = arith.divf %30, %31 : vector<1x128xf32>
    %33 = vector.broadcast %32 : vector<1x128xf32> to vector<8x128xf32>
    %34 = arith.subf %28, %33 : vector<8x128xf32>
    %35 = arith.mulf %34, %34 : vector<8x128xf32>
    %cst_18 = arith.constant dense<0.000000e+00> : vector<128xf32>
    %36 = vector.multi_reduction <add>, %35, %cst_18 [0] : vector<8x128xf32> to vector<128xf32>
    %37 = vector.shape_cast %36 : vector<128xf32> to vector<1x128xf32>
    %cst_19 = arith.constant 8.000000e+00 : f32
    %38 = vector.broadcast %cst_19 : f32 to vector<1x128xf32>
    %39 = arith.divf %37, %38 : vector<1x128xf32>
    %c2 = arith.constant 2 : index
    %c0_20 = arith.constant 0 : index
    %40 = vector.load %arg3[%c2, %c0_20] : memref<6x128xf32, #tpu.memory_space<vmem>>, vector<1x128xf32>
    %c3 = arith.constant 3 : index
    %c0_21 = arith.constant 0 : index
    %41 = vector.load %arg3[%c3, %c0_21] : memref<6x128xf32, #tpu.memory_space<vmem>>, vector<1x128xf32>
    %cst_22 = arith.constant 9.99999974E-6 : f32
    %42 = vector.broadcast %cst_22 : f32 to vector<1x128xf32>
    %43 = arith.addf %39, %42 : vector<1x128xf32>
    %44 = math.rsqrt %43 : vector<1x128xf32>
    %45 = arith.mulf %40, %44 : vector<1x128xf32>
    %46 = vector.broadcast %45 : vector<1x128xf32> to vector<8x128xf32>
    %47 = arith.mulf %34, %46 : vector<8x128xf32>
    %48 = vector.broadcast %41 : vector<1x128xf32> to vector<8x128xf32>
    %49 = arith.addf %47, %48 : vector<8x128xf32>
    %cst_23 = arith.constant 0.000000e+00 : f32
    %50 = vector.broadcast %cst_23 : f32 to vector<8x128xf32>
    %51 = arith.maximumf %49, %50 : vector<8x128xf32>
    %c1_24 = arith.constant 1 : index
    %c0_25 = arith.constant 0 : index
    %c0_26 = arith.constant 0 : index
    %52 = vector.load %arg2[%c1_24, %c0_25, %c0_26] : memref<2x128x128xf32, #tpu.memory_space<vmem>>, vector<1x128x128xf32>
    %53 = vector.shape_cast %52 : vector<1x128x128xf32> to vector<128x128xf32>
    %cst_27 = arith.constant dense<0.000000e+00> : vector<8x128xf32>
    %54 = tpu.matmul %51, %53, %cst_27 {dimension_numbers = #tpu.dot_dimension_numbers<[1], [0], [0], [1], [0, 0, 1, 1], [], []>} : vector<8x128xf32>, vector<128x128xf32>, vector<8x128xf32> -> vector<8x128xf32>
    %cst_28 = arith.constant dense<0.000000e+00> : vector<128xf32>
    %55 = vector.multi_reduction <add>, %54, %cst_28 [0] : vector<8x128xf32> to vector<128xf32>
    %56 = vector.shape_cast %55 : vector<128xf32> to vector<1x128xf32>
    %cst_29 = arith.constant 8.000000e+00 : f32
    %57 = vector.broadcast %cst_29 : f32 to vector<1x128xf32>
    %58 = arith.divf %56, %57 : vector<1x128xf32>
    %59 = vector.broadcast %58 : vector<1x128xf32> to vector<8x128xf32>
    %60 = arith.subf %54, %59 : vector<8x128xf32>
    %61 = arith.mulf %60, %60 : vector<8x128xf32>
    %cst_30 = arith.constant dense<0.000000e+00> : vector<128xf32>
    %62 = vector.multi_reduction <add>, %61, %cst_30 [0] : vector<8x128xf32> to vector<128xf32>
    %63 = vector.shape_cast %62 : vector<128xf32> to vector<1x128xf32>
    %cst_31 = arith.constant 8.000000e+00 : f32
    %64 = vector.broadcast %cst_31 : f32 to vector<1x128xf32>
    %65 = arith.divf %63, %64 : vector<1x128xf32>
    %c4 = arith.constant 4 : index
    %c0_32 = arith.constant 0 : index
    %66 = vector.load %arg3[%c4, %c0_32] : memref<6x128xf32, #tpu.memory_space<vmem>>, vector<1x128xf32>
    %c5 = arith.constant 5 : index
    %c0_33 = arith.constant 0 : index
    %67 = vector.load %arg3[%c5, %c0_33] : memref<6x128xf32, #tpu.memory_space<vmem>>, vector<1x128xf32>
    %cst_34 = arith.constant 9.99999974E-6 : f32
    %68 = vector.broadcast %cst_34 : f32 to vector<1x128xf32>
    %69 = arith.addf %65, %68 : vector<1x128xf32>
    %70 = math.rsqrt %69 : vector<1x128xf32>
    %71 = arith.mulf %66, %70 : vector<1x128xf32>
    %72 = vector.broadcast %71 : vector<1x128xf32> to vector<8x128xf32>
    %73 = arith.mulf %60, %72 : vector<8x128xf32>
    %74 = vector.broadcast %67 : vector<1x128xf32> to vector<8x128xf32>
    %75 = arith.addf %73, %74 : vector<8x128xf32>
    %cst_35 = arith.constant 0.000000e+00 : f32
    %76 = vector.broadcast %cst_35 : f32 to vector<8x128xf32>
    %77 = arith.maximumf %75, %76 : vector<8x128xf32>
    %c0_36 = arith.constant 0 : index
    %c0_37 = arith.constant 0 : index
    %78 = vector.load %arg4[%c0_36, %c0_37] : memref<128x128xf32, #tpu.memory_space<vmem>>, vector<128x128xf32>
    %cst_38 = arith.constant dense<0.000000e+00> : vector<8x128xf32>
    %79 = tpu.matmul %77, %78, %cst_38 {dimension_numbers = #tpu.dot_dimension_numbers<[1], [0], [0], [1], [0, 0, 1, 1], [], []>} : vector<8x128xf32>, vector<128x128xf32>, vector<8x128xf32> -> vector<8x128xf32>
    %c0_39 = arith.constant 0 : index
    %c0_40 = arith.constant 0 : index
    %80 = vector.load %arg5[%c0_39, %c0_40] : memref<1x128xf32, #tpu.memory_space<vmem>>, vector<1x128xf32>
    %81 = vector.broadcast %80 : vector<1x128xf32> to vector<8x128xf32>
    %82 = arith.addf %79, %81 : vector<8x128xf32>
    %c0_41 = arith.constant 0 : index
    %c0_42 = arith.constant 0 : index
    %83 = vector.load %arg6[%c0_41, %c0_42] : memref<8x128xf32, #tpu.memory_space<vmem>>, vector<8x128xf32>
    tpu.vector_store %arg6[%c0_41, %c0_42], %82 {strides = array<i32>} : memref<8x128xf32, #tpu.memory_space<vmem>>, vector<8x128xf32>,
    return
  }
}

</mosaic_0001>

<bundles_post_ra>
// kernel: mlp_forward.1
= control target key start
LH: loop header
LB: loop body
LE: loop exit
PB: predicated region body
PF: predicated region fallthrough
CT: control target
= control target key end

     0   :  { %11 = vsyncpa [#allocation3], 0  ;;  %s559_s0 = inlined_call_operand.vmem [shape: f32[8,128], index: 0, kind: input, shape index: {}]   ;;  %s560_s1 = inlined_call_operand.hbm [shape: f32[128,128], index: 1, kind: input, shape index: {}]   ;;  %s561_s2 = inlined_call_operand.hbm [shape: f32[2,128,128], index: 2, kind: input, shape index: {}]   ;;  %s562_s3 = inlined_call_operand.vmem [shape: f32[6,128], index: 3, kind: input, shape index: {}]   ;;  %s563_s4 = inlined_call_operand.hbm [shape: f32[128,128], index: 4, kind: input, shape index: {}]   ;;  %s564_s5 = inlined_call_operand.vmem [shape: f32[1,128], index: 5, kind: input, shape index: {}]   ;;  %s565_s6 = inlined_call_operand.hbm [shape: f32[8,128], index: 6, kind: output, shape index: {}]  }
   0x1   :  { %12 = vsyncpa [#allocation6], 0 }
   0x2   :  { %13 = vsyncpa [#allocation4], 0  ;;  %s33_s23 = sshll.u32 %s561_s2, 4  ;;  %s473_s24 = smov [#allocation5]   ;;  %s34_s23 = int_to_ptr.hbm [resolvable:$true] %s33_s23 }
   0x3   :  { %s35_s25 = sshll.u32 %s473_s24, 4  ;;  %s20_s28 = sshll.u32 %s560_s1, 4  ;;  %s36_s25 = int_to_ptr.vmem [resolvable:$true] %s35_s25  ;;  %s21_s28 = int_to_ptr.hbm [resolvable:$true] %s20_s28 }
   0x4   :  { %s474_s29 = smov 128   ;;  %s475_s30 = smov 8  }
   0x5   :  { %41 = dma.hbm_to_vmem [thread:$0]  %s34_s23, 4096, %s36_s25, [#allocation6], %s474_s29, %s474_s29, %s475_s30  }
   0x6   :  { %s476_s7 = smov [#allocation2]   ;;  %s48_s11 = sshll.u32 %s563_s4, 4  ;;  %s49_s11 = int_to_ptr.hbm [resolvable:$true] %s48_s11 }
   0x7   :  { %s22_s8 = sshll.u32 %s476_s7, 4  ;;  %s477_s2 = smov [#allocation7]   ;;  %s23_s8 = int_to_ptr.vmem [resolvable:$true] %s22_s8 }
   0x8   :  { %28 = dma.hbm_to_vmem [thread:$0]  %s21_s28, 2048, %s23_s8, [#allocation3], %s474_s29, %s474_s29, %s475_s30  }
   0x9   :  { %s50_s12 = sshll.u32 %s477_s2, 4  ;;  %s51_s12 = int_to_ptr.vmem [resolvable:$true] %s50_s12 }
   0xa   :  { %56 = dma.hbm_to_vmem [thread:$0]  %s49_s11, 2048, %s51_s12, [#allocation6], %s474_s29, %s474_s29, %s475_s30  }
   0xb   :  { %467 = dma.done.wait [#allocation3], 2048  }
   0xc   :  { %468 = vsyncadd [#allocation3], 4294965248 }
   0xd   :  { %469 = dma.done.wait [#allocation6], 6144  }
   0xe   :  { %470 = vsyncadd [#allocation6], 4294961152  ;;  %v87_v0 = vld [vmem:[#allocation2 + $0x78] sm:$0xff]  ;;  %v86_v1 = vld [vmem:[#allocation2 + $0x70] sm:$0xff]  ;;  %v478_v17 = vmov 8.0   ;;  %s479_s26 = smov [#allocation8]  }
   0xf   :  { %88 = vmatpush.msra.mxu0 %v87_v0  ;;  %v85_v2 = vld [vmem:[#allocation2 + $0x68] sm:$0xff]  ;;  %v84_v3 = vld [vmem:[#allocation2 + $0x60] sm:$0xff]  ;;  %v83_v4 = vld [vmem:[#allocation2 + $0x58] sm:$0xff]  ;;  %363 = vrcp.f32 %v478_v17  ;;  %s339_s27 = sshll.u32 %s479_s26, 4  ;;  %s341_s30 = sshll.u32 %s565_s6, 4  ;;  %s340_s27 = int_to_ptr.vmem [resolvable:$true] %s339_s27  ;;  %s342_s30 = int_to_ptr.hbm [resolvable:$true] %s341_s30 }
  0x10   :  { %v82_v5 = vld [vmem:[#allocation2 + $0x50] sm:$0xff]  ;;  %v81_v6 = vld [vmem:[#allocation2 + $0x48] sm:$0xff]  ;;  %v80_v7 = vld [vmem:[#allocation2 + $0x40] sm:$0xff] }
  0x11   :  { %89 = vmatpush.msra.mxu0 %v86_v1  ;;  %v79_v8 = vld [vmem:[#allocation2 + $0x38] sm:$0xff]  ;;  %v78_v9 = vld [vmem:[#allocation2 + $0x30] sm:$0xff]  ;;  %v77_v10 = vld [vmem:[#allocation2 + $0x28] sm:$0xff] }
  0x12   :  { %v76_v11 = vld [vmem:[#allocation2 + $0x20] sm:$0xff]  ;;  %v75_v12 = vld [vmem:[#allocation2 + $0x18] sm:$0xff]  ;;  %v74_v13 = vld [vmem:[#allocation2 + $0x10] sm:$0xff] }
  0x13   :  { %90 = vmatpush.msra.mxu0 %v85_v2  ;;  %v73_v14 = vld [vmem:[#allocation2 + $0x8] sm:$0xff]  ;;  %v72_v15 = vld [vmem:[#allocation2] sm:$0xff]  ;;  %v165_v21 = vld [vmem:[#allocation5 + $0x78] sm:$0xff] }
  0x14   :  { %v71_v16 = vld [vmem:[%s559_s0] sm:$0xff]  ;;  %166 = vmatpush.msra.mxu1 %v165_v21  ;;  %v164_v24 = vld [vmem:[#allocation5 + $0x70] sm:$0xff]  ;;  %v163_v27 = vld [vmem:[#allocation5 + $0x68] sm:$0xff] }
  0x15   :  { %91 = vmatpush.msra.mxu0 %v84_v3  ;;  %v364_v18 = vpop.eup %363  ;;  %v162_v29 = vld [vmem:[#allocation5 + $0x60] sm:$0xff]  ;;  %v161_v32 = vld [vmem:[#allocation5 + $0x58] sm:$0xff]  ;;  %v160_v34 = vld [vmem:[#allocation5 + $0x50] sm:$0xff] }
  0x16   :  { %v115_v19 = vmul.f32 8.0, %v364_v18  ;;  %167 = vmatpush.msra.mxu1 %v164_v24  ;;  %vm119_vm0 = vweird.f32 %v364_v18  ;;  %v159_v37 = vld [vmem:[#allocation5 + $0x48] sm:$0xff]  ;;  %v158_v39 = vld [vmem:[#allocation5 + $0x40] sm:$0xff]  ;;  %v157_v41 = vld [vmem:[#allocation5 + $0x38] sm:$0xff] }
  0x17   :  { %92 = vmatpush.msra.mxu0 %v83_v4  ;;  %v156_v43 = vld [vmem:[#allocation5 + $0x30] sm:$0xff]  ;;  %v155_v45 = vld [vmem:[#allocation5 + $0x28] sm:$0xff]  ;;  %v154_v47 = vld [vmem:[#allocation5 + $0x20] sm:$0xff] }
  0x18   :  { %v116_v20 = vsub.f32 1.0, %v115_v19  ;;  %168 = vmatpush.msra.mxu1 %v163_v27  ;;  %v153_v49 = vld [vmem:[#allocation5 + $0x18] sm:$0xff]  ;;  %v152_v51 = vld [vmem:[#allocation5 + $0x10] sm:$0xff]  ;;  %v151_v52 = vld [vmem:[#allocation5 + $0x8] sm:$0xff] }
  0x19   :  { %93 = vmatpush.msra.mxu0 %v82_v5  ;;  %v150_v54 = vld [vmem:[#allocation5] sm:$0xff]  ;;  %v233_v17 = vld [vmem:[#allocation5 + $0xd8] sm:$0xff]  ;;  %v232_v19 = vld [vmem:[#allocation5 + $0xd0] sm:$0xff] }
  0x1a   :  { %v117_v25 = vmul.f32 %v364_v18, %v116_v20  ;;  %169 = vmatpush.msra.mxu1 %v162_v29  ;;  %v131_v63 = vld [vmem:[%s562_s3] sm:$0x1]  ;;  %v359_v4 = vld [vmem:[%s562_s3 + $0x1] ss:$0 sm:$0xff]  ;;  %v231_v21 = vld [vmem:[#allocation5 + $0xc8] sm:$0xff] }
  0x1b   :  { %94 = vmatpush.msra.mxu0 %v81_v6  ;;  %v228_v27 = vld [vmem:[#allocation5 + $0xb0] sm:$0xff]  ;;  %v227_v29 = vld [vmem:[#allocation5 + $0xa8] sm:$0xff] }
  0x1c   :  { %v118_v30 = vadd.f32 %v364_v18, %v117_v25  ;;  %170 = vmatpush.msra.mxu1 %v161_v32  ;;  %v229_v25 = vld [vmem:[#allocation5 + $0xb8] sm:$0xff] }
  0x1d   :  { %95 = vmatpush.msra.mxu0 %v80_v7 }
  0x1e   :  { %v527_v35 = vsel %vm119_vm0, %v364_v18, %v118_v30  ;;  %171 = vmatpush.msra.mxu1 %v160_v34 }
  0x1f   :  { %96 = vmatpush.msra.mxu0 %v79_v8  ;;  %v237_v8 = vld [vmem:[#allocation5 + $0xf8] sm:$0xff] }
  0x20   :  { %172 = vmatpush.msra.mxu1 %v159_v37  ;;  %238 = vmatpush.msra.mxu2 %v237_v8  ;;  %v223_v37 = vld [vmem:[#allocation5 + $0x88] sm:$0xff]  ;;  %v301_v8 = vld [vmem:[#allocation7 + $0x40] sm:$0xff] }
  0x21   :  { %97 = vmatpush.msra.mxu0 %v78_v9 }
  0x22   :  { %173 = vmatpush.msra.mxu1 %v158_v39  ;;  %v222_v39 = vld [vmem:[#allocation5 + $0x80] sm:$0xff] }
  0x23   :  { %98 = vmatpush.msra.mxu0 %v77_v10 }
  0x24   :  { %174 = vmatpush.msra.mxu1 %v157_v41 }
  0x25   :  { %99 = vmatpush.msra.mxu0 %v76_v11  ;;  %v236_v11 = vld [vmem:[#allocation5 + $0xf0] sm:$0xff] }
  0x26   :  { %175 = vmatpush.msra.mxu1 %v156_v43  ;;  %239 = vmatpush.msra.mxu2 %v236_v11 }
  0x27   :  { %100 = vmatpush.msra.mxu0 %v75_v12 }
  0x28   :  { %176 = vmatpush.msra.mxu1 %v155_v45 }
  0x29   :  { %101 = vmatpush.msra.mxu0 %v74_v13  ;;  %v235_v13 = vld [vmem:[#allocation5 + $0xe8] sm:$0xff] }
  0x2a   :  { %177 = vmatpush.msra.mxu1 %v154_v47  ;;  %240 = vmatpush.msra.mxu2 %v235_v13 }
  0x2b   :  { %102 = vmatpush.msra.mxu0 %v73_v14 }
  0x2c   :  { %178 = vmatpush.msra.mxu1 %v153_v49 }
  0x2d   :  { %103 = vmatpush.msra.mxu0 %v72_v15  ;;  %v234_v15 = vld [vmem:[#allocation5 + $0xe0] sm:$0xff] }
  0x2e   :  { %104 = vmatmul.f32.vlgmr.msra.gmra.mxu0 %v71_v16  ;;  %179 = vmatpush.msra.mxu1 %v152_v51 }
  0x2f   :  { %241 = vmatpush.msra.mxu2 %v234_v15 }
  0x30   :  { %180 = vmatpush.msra.mxu1 %v151_v52 }
  0x31   :  { %242 = vmatpush.msra.mxu2 %v233_v17 }
  0x32   :  { %181 = vmatpush.msra.mxu1 %v150_v54 }
  0x33   :  { %243 = vmatpush.msra.mxu2 %v232_v19 }
  0x35   :  { %244 = vmatpush.msra.mxu2 %v231_v21  ;;  %v294_v21 = vld [vmem:[#allocation7 + $0x8] sm:$0xff] }
  0xab   :  { %v105_v22 = vpop.f32.mrf.mxu0 }
  0xac   :  { %v108_v23 = vrot.slane %v105_v22, 4 }
  0xae   :  { %v109_v26 = vadd.f32 %v108_v23, %v105_v22  ;;  %v230_v23 = vld [vmem:[#allocation5 + $0xc0] sm:$0xff] }
  0xaf   :  { %245 = vmatpush.msra.mxu2 %v230_v23  ;;  %v293_v23 = vld [vmem:[#allocation7] sm:$0xff] }
  0xb0   :  { %v110_v28 = vrot.slane %v109_v26, 2 }
  0xb1   :  { %246 = vmatpush.msra.mxu2 %v229_v25 }
  0xb2   :  { %v111_v31 = vadd.f32 %v110_v28, %v109_v26 }
  0xb3   :  { %247 = vmatpush.msra.mxu2 %v228_v27 }
  0xb4   :  { %v112_v33 = vrot.slane %v111_v31, 1 }
  0xb5   :  { %248 = vmatpush.msra.mxu2 %v227_v29 }
  0xb6   :  { %v113_v36 = vadd.f32 %v112_v33, %v111_v31  ;;  %v226_v31 = vld [vmem:[#allocation5 + $0xa0] sm:$0xff]  ;;  %v225_v33 = vld [vmem:[#allocation5 + $0x98] sm:$0xff] }
  0xb7   :  { %249 = vmatpush.msra.mxu2 %v226_v31 }
  0xb8   :  { %v121_v38 = vmul.f32 %v527_v35, %v113_v36  ;;  %v224_v36 = vld [vmem:[#allocation5 + $0x90] sm:$0xff] }
  0xb9   :  { %250 = vmatpush.msra.mxu2 %v225_v33 }
  0xba   :  { %v122_v40 = vsub.f32 %v105_v22, %v121_v38 }
  0xbb   :  { %251 = vmatpush.msra.mxu2 %v224_v36 }
  0xbc   :  { %v123_v42 = vmul.f32 %v122_v40, %v122_v40 }
  0xbd   :  { %252 = vmatpush.msra.mxu2 %v223_v37 }
  0xbe   :  { %v124_v44 = vrot.slane %v123_v42, 4 }
  0xbf   :  { %253 = vmatpush.msra.mxu2 %v222_v39 }
  0xc0   :  { %v125_v46 = vadd.f32 %v124_v44, %v123_v42 }
  0xc2   :  { %v126_v48 = vrot.slane %v125_v46, 2 }
  0xc4   :  { %v127_v50 = vadd.f32 %v126_v48, %v125_v46  ;;  %v202_v48 = vld [vmem:[%s562_s3 + $0x2] sm:$0x1] }
  0xc6   :  { %v128_v53 = vrot.slane %v127_v50, 1 }
  0xc8   :  { %v129_v55 = vadd.f32 %v128_v53, %v127_v50  ;;  %v360_v53 = vld [vmem:[%s562_s3 + $0x3] ss:$0 sm:$0xff] }
  0xca   :  { %v130_v56 = vmul.f32 %v129_v55, %v527_v35 }
  0xcc   :  { %v133_v57 = vadd.f32 1e-05, %v130_v56 }
  0xce   :  { %365 = vrsqrt.f32 %v133_v57  ;;  %vm140_vm2 = vweird.f32 %v133_v57 }
  0xd4   :  { %v366_v58 = vpop.eup %365 }
  0xd5   :  { %v135_v59 = vmul.f32 %v366_v58, %v133_v57  ;;  %vm141_vm1 = vweird.f32 %v366_v58  ;;  %v308_v57 = vld [vmem:[#allocation7 + $0x78] sm:$0xff] }
  0xd6   :  { %vm142_vm3 = vmor %vm140_vm2, %vm141_vm1  ;;  %313 = vmatpush.msra.mxu3 %v308_v57 }
  0xd7   :  { %v136_v60 = vmul.f32 %v366_v58, %v135_v59 }
  0xd9   :  { %v137_v61 = vmul.f32 0.5, %v136_v60  ;;  %v307_v60 = vld [vmem:[#allocation7 + $0x70] sm:$0xff] }
  0xda   :  { %314 = vmatpush.msra.mxu3 %v307_v60 }
  0xdb   :  { %v138_v62 = vsub.f32 1.5, %v137_v61 }
  0xdd   :  { %v139_v0 = vmul.f32 %v366_v58, %v138_v62  ;;  %v306_v62 = vld [vmem:[#allocation7 + $0x68] sm:$0xff] }
  0xde   :  { %315 = vmatpush.msra.mxu3 %v306_v62 }
  0xdf   :  { %v143_v1 = vsel %vm142_vm3, %v366_v58, %v139_v0  ;;  %v305_v0 = vld [vmem:[#allocation7 + $0x60] sm:$0xff] }
  0xe0   :  { %v144_v2 = vmul.f32 %v143_v1, %v131_v63  ;;  %316 = vmatpush.msra.mxu3 %v305_v0 }
  0xe2   :  { %v145_v3 = vperm.slane %v144_v2, 0  ;;  %v304_v2 = vld [vmem:[#allocation7 + $0x58] sm:$0xff] }
  0xe3   :  { %317 = vmatpush.msra.mxu3 %v304_v2 }
  0xe4   :  { %v146_v5 = vmul.f32 %v145_v3, %v122_v40 }
  0xe6   :  { %v148_v6 = vadd.f32 %v359_v4, %v146_v5  ;;  %v303_v4 = vld [vmem:[#allocation7 + $0x50] sm:$0xff] }
  0xe7   :  { %318 = vmatpush.msra.mxu3 %v303_v4 }
  0xe8   :  { %v149_v7 = vmax.f32 %v148_v6, 0.0  ;;  %v302_v6 = vld [vmem:[#allocation7 + $0x48] sm:$0xff] }
  0xe9   :  { %319 = vmatpush.msra.mxu3 %v302_v6 }
  0xea   :  { %182 = vmatmul.f32.vlgmr.msra.gmra.mxu1 %v149_v7 }
  0xeb   :  { %320 = vmatpush.msra.mxu3 %v301_v8 }
 0x167   :  { %v183_v9 = vpop.f32.mrf.mxu1 }
 0x168   :  { %v186_v10 = vrot.slane %v183_v9, 4 }
 0x16a   :  { %v187_v12 = vadd.f32 %v186_v10, %v183_v9  ;;  %v300_v10 = vld [vmem:[#allocation7 + $0x38] sm:$0xff] }
 0x16b   :  { %321 = vmatpush.msra.mxu3 %v300_v10 }
 0x16c   :  { %v188_v14 = vrot.slane %v187_v12, 2 }
 0x16e   :  { %v189_v16 = vadd.f32 %v188_v14, %v187_v12  ;;  %v299_v12 = vld [vmem:[#allocation7 + $0x30] sm:$0xff]  ;;  %v298_v14 = vld [vmem:[#allocation7 + $0x28] sm:$0xff] }
 0x16f   :  { %322 = vmatpush.msra.mxu3 %v299_v12 }
 0x170   :  { %v190_v18 = vrot.slane %v189_v16, 1 }
 0x171   :  { %323 = vmatpush.msra.mxu3 %v298_v14 }
 0x172   :  { %v191_v20 = vadd.f32 %v190_v18, %v189_v16  ;;  %v297_v16 = vld [vmem:[#allocation7 + $0x20] sm:$0xff]  ;;  %v296_v18 = vld [vmem:[#allocation7 + $0x18] sm:$0xff] }
 0x173   :  { %324 = vmatpush.msra.mxu3 %v297_v16 }
 0x174   :  { %v192_v22 = vmul.f32 %v191_v20, %v527_v35  ;;  %v295_v20 = vld [vmem:[#allocation7 + $0x10] sm:$0xff] }
 0x175   :  { %325 = vmatpush.msra.mxu3 %v296_v18 }
 0x176   :  { %v193_v24 = vsub.f32 %v183_v9, %v192_v22 }
 0x177   :  { %326 = vmatpush.msra.mxu3 %v295_v20 }
 0x178   :  { %v194_v26 = vmul.f32 %v193_v24, %v193_v24 }
 0x179   :  { %327 = vmatpush.msra.mxu3 %v294_v21 }
 0x17a   :  { %v195_v28 = vrot.slane %v194_v26, 4 }
 0x17b   :  { %328 = vmatpush.msra.mxu3 %v293_v23 }
 0x17c   :  { %v196_v30 = vadd.f32 %v195_v28, %v194_v26 }
 0x17e   :  { %v197_v32 = vrot.slane %v196_v30, 2 }
 0x180   :  { %v198_v34 = vadd.f32 %v197_v32, %v196_v30  ;;  %v274_v32 = vld [vmem:[%s562_s3 + $0x4] sm:$0x1] }
 0x182   :  { %v199_v38 = vrot.slane %v198_v34, 1 }
 0x184   :  { %v200_v40 = vadd.f32 %v199_v38, %v198_v34 }
 0x186   :  { %v201_v41 = vmul.f32 %v200_v40, %v527_v35 }
 0x188   :  { %v204_v42 = vadd.f32 1e-05, %v201_v41  ;;  %v362_v41 = vld [vmem:[%s564_s5] ss:$0 sm:$0xff] }
 0x18a   :  { %367 = vrsqrt.f32 %v204_v42  ;;  %vm211_vm5 = vweird.f32 %v204_v42 }
 0x190   :  { %v368_v43 = vpop.eup %367 }
 0x191   :  { %v206_v44 = vmul.f32 %v368_v43, %v204_v42  ;;  %vm212_vm4 = vweird.f32 %v368_v43 }
 0x192   :  { %vm213_vm6 = vmor %vm211_vm5, %vm212_vm4 }
 0x193   :  { %v207_v45 = vmul.f32 %v368_v43, %v206_v44 }
 0x195   :  { %v208_v46 = vmul.f32 0.5, %v207_v45 }
 0x197   :  { %v209_v47 = vsub.f32 1.5, %v208_v46 }
 0x199   :  { %v210_v49 = vmul.f32 %v368_v43, %v209_v47 }
 0x19b   :  { %v214_v50 = vsel %vm213_vm6, %v368_v43, %v210_v49 }
 0x19c   :  { %v215_v51 = vmul.f32 %v214_v50, %v202_v48 }
 0x19e   :  { %v216_v52 = vperm.slane %v215_v51, 0 }
 0x1a0   :  { %v217_v54 = vmul.f32 %v216_v52, %v193_v24 }
 0x1a2   :  { %v219_v55 = vadd.f32 %v360_v53, %v217_v54 }
 0x1a4   :  { %v220_v56 = vmax.f32 %v219_v55, 0.0 }
 0x1a6   :  { %254 = vmatmul.f32.vlgmr.msra.gmra.mxu2 %v220_v56 }
 0x229   :  { %v255_v58 = vpop.f32.mrf.mxu2 }
 0x22a   :  { %v258_v59 = vrot.slane %v255_v58, 4 }
 0x22c   :  { %v259_v61 = vadd.f32 %v258_v59, %v255_v58 }
 0x22e   :  { %v260_v63 = vrot.slane %v259_v61, 2 }
 0x230   :  { %v261_v1 = vadd.f32 %v260_v63, %v259_v61 }
 0x232   :  { %v262_v3 = vrot.slane %v261_v1, 1 }
 0x234   :  { %v263_v5 = vadd.f32 %v262_v3, %v261_v1 }
 0x236   :  { %v264_v7 = vmul.f32 %v263_v5, %v527_v35 }
 0x238   :  { %v265_v9 = vsub.f32 %v255_v58, %v264_v7 }
 0x23a   :  { %v266_v11 = vmul.f32 %v265_v9, %v265_v9 }
 0x23c   :  { %v267_v13 = vrot.slane %v266_v11, 4 }
 0x23e   :  { %v268_v15 = vadd.f32 %v267_v13, %v266_v11 }
 0x240   :  { %v269_v17 = vrot.slane %v268_v15, 2 }
 0x242   :  { %v270_v19 = vadd.f32 %v269_v17, %v268_v15 }
 0x244   :  { %v271_v22 = vrot.slane %v270_v19, 1 }
 0x246   :  { %v272_v24 = vadd.f32 %v271_v22, %v270_v19 }
 0x248   :  { %v273_v25 = vmul.f32 %v272_v24, %v527_v35  ;;  %v361_v35 = vld [vmem:[%s562_s3 + $0x5] ss:$0 sm:$0xff] }
 0x24a   :  { %v276_v26 = vadd.f32 1e-05, %v273_v25 }
 0x24c   :  { %369 = vrsqrt.f32 %v276_v26  ;;  %vm283_vm8 = vweird.f32 %v276_v26 }
 0x252   :  { %v370_v27 = vpop.eup %369 }
 0x253   :  { %v278_v28 = vmul.f32 %v370_v27, %v276_v26  ;;  %vm284_vm7 = vweird.f32 %v370_v27 }
 0x254   :  { %vm285_vm9 = vmor %vm283_vm8, %vm284_vm7 }
 0x255   :  { %v279_v29 = vmul.f32 %v370_v27, %v278_v28 }
 0x257   :  { %v280_v30 = vmul.f32 0.5, %v279_v29 }
 0x259   :  { %v281_v31 = vsub.f32 1.5, %v280_v30 }
 0x25b   :  { %v282_v33 = vmul.f32 %v370_v27, %v281_v31 }
 0x25d   :  { %v286_v34 = vsel %vm285_vm9, %v370_v27, %v282_v33 }
 0x25e   :  { %v287_v36 = vmul.f32 %v286_v34, %v274_v32 }
 0x260   :  { %v288_v37 = vperm.slane %v287_v36, 0 }
 0x262   :  { %v289_v38 = vmul.f32 %v288_v37, %v265_v9 }
 0x264   :  { %v291_v39 = vadd.f32 %v361_v35, %v289_v38 }
 0x266   :  { %v292_v40 = vmax.f32 %v291_v39, 0.0 }
 0x268   :  { %329 = vmatmul.f32.vlgmr.msra.gmra.mxu3 %v292_v40 }
 0x2eb   :  { %v330_v42 = vpop.f32.mrf.mxu3 }
 0x2ec   :  { %v331_v43 = vadd.f32 %v362_v41, %v330_v42 }
 0x2ee   :  { %333 = vst [vmem:[#allocation8] sm:$0xff] %v331_v43 }
 0x2ef   :  { %344 = dma.vmem_to_hbm [thread:$0]  %s340_s27, 128, %s342_s30, [#allocation4]  }
 0x2f0   :  { %471 = dma.done.wait [#allocation4], 128  }
 0x2f1   :  { %472 = vsyncadd [#allocation4], 4294967168 }
 0x2f2   :  { %349 = vsyncpa [#allocation3], 1 }
 0x2f3   :  { %350 = vsyncpa [#allocation6], 1 }
 0x2f4   :  { %351 = vsyncpa [#allocation4], 1 }

</bundles_post_ra>
